<compile_context>
chip_gen: v7x
topology: tpu7x:2x2x1
jax: 0.10.0
libtpu: 0.0.40
codegen_flags: <defaults>
</compile_context>

<pallas_src>
import functools
import math

import jax
import jax.numpy as jnp
import numpy as np
from jax.experimental import pallas as pl
from jax.experimental.pallas import tpu as pltpu

# Safe on every generation (v7x physical VMEM is 64 MiB per TensorCore).
_VMEM_LIMIT = 32 * 1024 * 1024


# ----------------------------------------------------------------------------
# Kernel 1: fused q/k/v projection == (N, Cin) @ (Cin, 3*Cout) matmul,
# row-tiled so it pipelines (DMA/compute overlap) and shards across cores.
# ----------------------------------------------------------------------------
def _matmul_kernel(x_ref, w_ref, o_ref):
    o_ref[...] = jnp.dot(x_ref[...], w_ref[...],
                         preferred_element_type=jnp.float32)


def qkv_projection(x_flat, w_qkv):
    """x_flat: (N, Cin), w_qkv: (Cin, 3*Cout) -> (N, 3*Cout)."""
    N, Cin = x_flat.shape
    Cout3 = w_qkv.shape[1]
    # Large tiles amortize the per-step overhead; small inputs still get >= 2
    # grid steps so both TensorCores (v7x) / megacore halves have work.
    tile_m = 1024 if N >= 2048 else 256
    n_pad = (-N) % tile_m
    if n_pad:
        x_flat = jnp.pad(x_flat, ((0, n_pad), (0, 0)))
    n_padded = N + n_pad

    out = pl.pallas_call(
        _matmul_kernel,
        out_shape=jax.ShapeDtypeStruct((n_padded, Cout3), jnp.float32),
        grid=(n_padded // tile_m,),
        in_specs=[pl.BlockSpec((tile_m, Cin), lambda i: (i, 0)),
                  pl.BlockSpec((Cin, Cout3), lambda i: (0, 0))],
        out_specs=pl.BlockSpec((tile_m, Cout3), lambda i: (i, 0)),
        compiler_params=pltpu.CompilerParams(
            dimension_semantics=("parallel",),
            vmem_limit_bytes=_VMEM_LIMIT),
    )(x_flat, w_qkv)
    return out[:N]


# ----------------------------------------------------------------------------
# Kernel 2: windowed per-channel attention over a row tile.
#   q_ref : (TH,        W,  C)  queries for TH output rows
#   k_ref : (TH+K-1,    Wp, C)  halo'd keys   (padded columns, halo rows)
#   v_ref : (TH+K-1,    Wp, C)  halo'd values
#   rel   : (K*K, C)            relative positional table (rel_h/rel_w merged)
#   s_ref : (K*K, TH, W, C)     VMEM scratch caching the q*k scores
# For offset j=(dy,dx): score[c] = q[c] * k[h+dy, w+dx, c]; softmax over the
# K*K offsets per channel; output = sum_j p_j * (v_j + rel_j).
# ----------------------------------------------------------------------------
def _attn_kernel(q_ref, k_ref, v_ref, rel_ref, o_ref, s_ref, *, K):
    TH, W, C = q_ref.shape

    q = q_ref[...]                 # (TH, W, C)
    rel = rel_ref[...]             # (K*K, C), loaded once (broadcast hoisted)

    # ---- pass 1: scores (cached in scratch) + running max ------------------
    m = jnp.full((TH, W, C), -jnp.inf, dtype=jnp.float32)
    kk = k_ref[...]                # (TH+K-1, Wp, C)
    for dx in range(K):
        kd = kk[:, dx:dx + W, :]   # ONE sublane shift per dx (K total)
        for dy in range(K):
            s = q * kd[dy:dy + TH]          # dy: leading-dim slice -> free
            s_ref[dy * K + dx] = s          # cache, no recompute in pass 2
            m = jnp.maximum(m, s)

    # ---- pass 2: softmax + weighted sum of (v + rel) ------------------------
    den = jnp.zeros((TH, W, C), dtype=jnp.float32)
    acc = jnp.zeros((TH, W, C), dtype=jnp.float32)
    vv = v_ref[...]                # (TH+K-1, Wp, C)
    for dx in range(K):
        vd = vv[:, dx:dx + W, :]   # ONE sublane shift per dx (K total)
        for dy in range(K):
            j = dy * K + dx
            p = jnp.exp(s_ref[j] - m)
            den = den + p
            acc = acc + p * (vd[dy:dy + TH] + rel[j])   # rel[j]: (C,) bias

    # divide -> EUP approx reciprocal (frees the VALU slots)
    o_ref[...] = (acc * pl.reciprocal(den, approx=True)).astype(o_ref.dtype)


def windowed_attention(q, kpad, vpad, rel_table, K, *, row_tile=8):
    B, H, W, C = q.shape
    Hp, Wp = kpad.shape[1], kpad.shape[2]
    assert Hp - K + 1 == H and Wp - K + 1 == W, "module requires 2*pad == K-1"
    KK = K * K

    TH = row_tile if H % row_tile == 0 else H
    nH = H // TH
    THK = TH + K - 1

    # Halo-tiled k/v: (B, nH, TH+K-1, Wp, C); row-tile t covers padded rows
    # [t*TH, t*TH + TH + K - 1).  The (K-1)/TH overlap buys plain
    # non-overlapping BlockSpecs and bounded VMEM per grid step.
    rows = np.arange(nH)[:, None] * TH + np.arange(THK)[None, :]   # (nH, THK)
    k_halo = kpad[:, rows]          # (B, nH, THK, Wp, C)
    v_halo = vpad[:, rows]

    return pl.pallas_call(
        functools.partial(_attn_kernel, K=K),
        out_shape=jax.ShapeDtypeStruct((B, H, W, C), jnp.float32),
        grid=(B, nH),
        in_specs=[
            pl.BlockSpec((None, TH, W, C), lambda b, t: (b, t, 0, 0)),
            pl.BlockSpec((None, None, THK, Wp, C),
                         lambda b, t: (b, t, 0, 0, 0)),
            pl.BlockSpec((None, None, THK, Wp, C),
                         lambda b, t: (b, t, 0, 0, 0)),
            pl.BlockSpec((KK, C), lambda b, t: (0, 0)),
        ],
        out_specs=pl.BlockSpec((None, TH, W, C), lambda b, t: (b, t, 0, 0)),
        scratch_shapes=[pltpu.VMEM((KK, TH, W, C), jnp.float32)],
        compiler_params=pltpu.CompilerParams(
            dimension_semantics=("parallel", "parallel"),
            vmem_limit_bytes=_VMEM_LIMIT),
    )(q, k_halo, v_halo, rel_table)


# ----------------------------------------------------------------------------
# Full AttentionConv forward (glue + Pallas hot path).
# ----------------------------------------------------------------------------
def attention_conv_forward(x_nchw, wq, wk, wv, rel_h, rel_w, *, kernel_size,
                           padding):
    B, Cin, H, W = x_nchw.shape
    Cout = wq.shape[1]
    K = kernel_size
    KK = K * K

    # NCHW -> NHWC (lanes = channels).
    x = jnp.transpose(x_nchw, (0, 2, 3, 1)).astype(jnp.float32)

    # Fused q/k/v 1x1 conv on the UNPADDED input: one matmul instead of three,
    # x is read from HBM once.
    w_qkv = jnp.concatenate([wq, wk, wv], axis=1)            # (Cin, 3*Cout)
    qkv = qkv_projection(x.reshape(B * H * W, Cin), w_qkv)   # (B*H*W, 3*Cout)
    qkv = qkv.reshape(B, H, W, 3 * Cout)
    q = qkv[..., :Cout]
    k = qkv[..., Cout:2 * Cout]
    v = qkv[..., 2 * Cout:]

    # Zero-pad k/v spatially AFTER the projection (== conv of the padded input
    # since bias=False).
    pw = ((0, 0), (padding, padding), (padding, padding), (0, 0))
    kpad = jnp.pad(k, pw)
    vpad = jnp.pad(v, pw)

    # rel table: window offset j = dy*K + dx;
    #   channels [0, C/2)  get rel_h[c, dy]   (broadcast over dx)
    #   channels [C/2, C)  get rel_w[c', dx]  (broadcast over dy)
    i_idx = jnp.arange(KK) // K
    j_idx = jnp.arange(KK) % K
    rel_table = jnp.concatenate([rel_h[:, i_idx].T, rel_w[:, j_idx].T], axis=1)

    out_nhwc = windowed_attention(q, kpad, vpad, rel_table, K)
    # NHWC -> NCHW (matches PyTorch output layout)
    return jnp.transpose(out_nhwc, (0, 3, 1, 2))


# ----------------------------------------------------------------------------
# Pure-JAX reference (mirrors the PyTorch code line by line) for validation.
# ----------------------------------------------------------------------------
def attention_conv_reference(x, wq, wk, wv, rel_h, rel_w, *, kernel_size,
                             padding):
    B, Cin, H, W = x.shape
    Cout = wq.shape[1]
    K = kernel_size
    xp = jnp.pad(x, ((0, 0), (0, 0), (padding, padding), (padding, padding)))

    q = jnp.einsum('bchw,cd->bdhw', x, wq)
    k = jnp.einsum('bchw,cd->bdhw', xp, wk)
    v = jnp.einsum('bchw,cd->bdhw', xp, wv)

    def unfold(t):  # (B, C, Hp, Wp) -> (B, C, H, W, K, K)
        return jnp.stack(
            [jnp.stack([t[:, :, i:i + H, j:j + W] for j in range(K)], axis=-1)
             for i in range(K)], axis=-2)

    k_unf = unfold(k)
    v_unf = unfold(v)
    v_h, v_w = v_unf[:, :Cout // 2], v_unf[:, Cout // 2:]
    v_h = v_h + rel_h.reshape(1, Cout // 2, 1, 1, K, 1)
    v_w = v_w + rel_w.reshape(1, Cout // 2, 1, 1, 1, K)
    v_unf = jnp.concatenate([v_h, v_w], axis=1)

    k_flat = k_unf.reshape(B, Cout, H, W, K * K)
    v_flat = v_unf.reshape(B, Cout, H, W, K * K)
    scores = q[..., None] * k_flat
    attn = jax.nn.softmax(scores, axis=-1)
    return jnp.sum(attn * v_flat, axis=-1)  # (B, Cout, H, W)


if __name__ == "__main__":
    # Small shapes consistent with the module (groups divides out_channels).
    B, Cin, H, W = 2, 4, 16, 16
    Cout, K, stride, padding, groups = 8, 3, 1, 1, 2

    key = jax.random.PRNGKey(0)
    kx, kq, kk_, kv, krh, krw = jax.random.split(key, 6)

    x = jax.random.normal(kx, (B, Cin, H, W), dtype=jnp.float32)

    # Deterministic parameter init (kaiming-normal-ish std for the 1x1 convs).
    std = math.sqrt(2.0 / Cout)  # fan_out = Cout * 1 * 1
    wq = jax.random.normal(kq, (Cin, Cout), dtype=jnp.float32) * std
    wk = jax.random.normal(kk_, (Cin, Cout), dtype=jnp.float32) * std
    wv = jax.random.normal(kv, (Cin, Cout), dtype=jnp.float32) * std
    rel_h = jax.random.normal(krh, (Cout // 2, K), dtype=jnp.float32)
    rel_w = jax.random.normal(krw, (Cout // 2, K), dtype=jnp.float32)

    out = attention_conv_forward(x, wq, wk, wv, rel_h, rel_w,
                                 kernel_size=K, padding=padding)
    out = jax.block_until_ready(out)

    ref = attention_conv_reference(x, wq, wk, wv, rel_h, rel_w,
                                   kernel_size=K, padding=padding)
    ref = jax.block_until_ready(ref)

    # Tolerance relaxed vs. the previous version: the softmax normalization now
    # uses the EUP approximate reciprocal (~1e-3-level relative error).
    np.testing.assert_allclose(np.asarray(out), np.asarray(ref),
                               rtol=1e-2, atol=1e-2)
    print("KERNEL_OK")
</pallas_src>

<mosaic_0001>
module attributes {stable_mosaic.version = 11 : i64} {
  func.func @_matmul_kernel(%arg0: i32, %arg1: memref<256x4xf32, #tpu.memory_space<vmem>>, %arg2: memref<4x24xf32, #tpu.memory_space<vmem>>, %arg3: memref<256x24xf32, #tpu.memory_space<vmem>>) attributes {dimension_semantics = [#tpu.dimension_semantics<parallel>], iteration_bounds = array<i64: 2>, scalar_prefetch = 0 : i64, scratch_operands = 0 : i64, tpu.core_type = #tpu.core_type<tc>, window_params = [{transform_indices = @transform_0, window_bounds = array<i64: 256, 4>}, {pipeline_mode = #tpu.pipeline_mode<synchronous>, transform_indices = @transform_1, window_bounds = array<i64: 4, 24>}, {transform_indices = @transform_2, window_bounds = array<i64: 256, 24>}]} {
    %c0 = arith.constant 0 : index
    %c0_0 = arith.constant 0 : index
    %0 = vector.load %arg1[%c0, %c0_0] : memref<256x4xf32, #tpu.memory_space<vmem>>, vector<256x4xf32>
    %c0_1 = arith.constant 0 : index
    %c0_2 = arith.constant 0 : index
    %1 = vector.load %arg2[%c0_1, %c0_2] : memref<4x24xf32, #tpu.memory_space<vmem>>, vector<4x24xf32>
    %cst = arith.constant dense<0.000000e+00> : vector<256x24xf32>
    %2 = tpu.matmul %0, %1, %cst {dimension_numbers = #tpu.dot_dimension_numbers<[1], [0], [0], [1], [0, 0, 1, 1], [], []>} : vector<256x4xf32>, vector<4x24xf32>, vector<256x24xf32> -> vector<256x24xf32>
    %c0_3 = arith.constant 0 : index
    %c0_4 = arith.constant 0 : index
    %3 = vector.load %arg3[%c0_3, %c0_4] : memref<256x24xf32, #tpu.memory_space<vmem>>, vector<256x24xf32>
    tpu.vector_store %arg3[%c0_3, %c0_4], %2 {strides = array<i32>} : memref<256x24xf32, #tpu.memory_space<vmem>>, vector<256x24xf32>,
    return
  }
  func.func @transform_0(%arg0: i32) -> (i32, i32) {
    %c0_i32 = arith.constant 0 : i32
    %c0_i32_0 = arith.constant 0 : i32
    return %arg0, %c0_i32 : i32, i32
  }
  func.func @transform_1(%arg0: i32) -> (i32, i32) {
    %c0_i32 = arith.constant 0 : i32
    %c0_i32_0 = arith.constant 0 : i32
    %c0_i32_1 = arith.constant 0 : i32
    return %c0_i32, %c0_i32_0 : i32, i32
  }
  func.func @transform_2(%arg0: i32) -> (i32, i32) {
    %c0_i32 = arith.constant 0 : i32
    %c0_i32_0 = arith.constant 0 : i32
    return %arg0, %c0_i32 : i32, i32
  }
}

</mosaic_0001>

<bundles_post_ra>
// kernel: tpu_custom_call.1
= control target key start
LH: loop header
LB: loop body
LE: loop exit
PB: predicated region body
PF: predicated region fallthrough
CT: control target
= control target key end

     0   :  { %s755_s9 = smov 0   ;;  %s914_s0 = inlined_call_operand.vmem [shape: f32[512,4], index: 0, kind: input, shape index: {}]   ;;  %s915_s1 = inlined_call_operand.vmem [shape: f32[4,24], index: 1, kind: input, shape index: {}]   ;;  %s916_s2 = inlined_call_operand.vmem [shape: f32[512,24], index: 2, kind: output, shape index: {}]  }
   0x1 LB: > { %s595_s10 = sadd.s32 4294967295, %s738_s9   ;;  %p599_p0 = scmp.ge.s32.totalorder %s738_s9, 1  ;;  %s738_s9 = sphi %s755_s9, %s12_s9  }
   0x2   : > { %p113_p1 = scmp.lt.s32.totalorder %s738_s9, 3 }
   0x4   : > { %p114_p2 = pnand %p599_p0, %p113_p1 }
   0x5   : > { %v179_v0 = vld [vmem:[%s915_s1] sm:$0xf] (!%p114_p2)  ;;  %vm277_vm0 = vcmask (!%p114_p2), 1043456   ;;  %s600_s13 = sshll.u32 (!%p114_p2), %s595_s10, 5  ;;  %vm180_vm1 = vcmask (!%p114_p2), 31744   ;;  %vm506_vm2 = vcmask (!%p114_p2), 195584  }
   0x6   : > { %117 = sbr.rel (%p114_p2) target bundleno = 261 (0x105), region = 28  ;;  %672 = vmatprep.subr.msk.mxu0 (!%p114_p2), %vm277_vm0, %v179_v0  ;;  %722 = vmatprep.subr.msk.mxu1 (!%p114_p2), %vm277_vm0, %v179_v0  ;;  %p136_p3 = scmp.lt.s32.totalorder (!%p114_p2), %s600_s13, 63 }
   0x7   : > { %673 = vmatpush3.msk.msra.mxu0 (!%p114_p2), %vm277_vm0, %v179_v0  ;;  %723 = vmatpush3.msk.msra.mxu1 (!%p114_p2), %vm277_vm0, %v179_v0 }
   0xd   : > { %s918_s13 = smov (!%p136_p3, %s600_s13), 63 }
   0xe   : > { %s601_s14 = sshll.u32 %s918_s13, 3 }
   0xf   : > { %s774_s17 = scalar_lea.vmem %s914_s0, %s601_s14  ;;  %s845_s20 = scalar_lea.vmem %s916_s2, %s601_s14 }
  0x10   : > { %v147_v1 = vld [vmem:[%s774_s17] sm:$0xff]  ;;  %v148_v3 = vld [vmem:[%s774_s17 + $0x8] sm:$0xff]  ;;  %v149_v5 = vld [vmem:[%s774_s17 + $0x10] sm:$0xff] }
  0x11   : > { %v163_v2 = vld [vmem:[%s774_s17 + $0x80] sm:$0xff]  ;;  %674 = vmatprep.mubr.msk.f32.mxu0 %vm180_vm1, %v147_v1  ;;  %v164_v4 = vld [vmem:[%s774_s17 + $0x88] sm:$0xff]  ;;  %v165_v6 = vld [vmem:[%s774_s17 + $0x90] sm:$0xff] }
  0x12   : > { %698 = vmatprep.mubr.msk.f32.mxu1 %vm180_vm1, %v163_v2  ;;  %675 = vmatmul.mubr.msk.f32.vlgmr.msra.gmra.mrb[0].mxu0 %vm180_vm1, %v148_v3  ;;  %v150_v7 = vld [vmem:[%s774_s17 + $0x18] sm:$0xff]  ;;  %v151_v9 = vld [vmem:[%s774_s17 + $0x20] sm:$0xff]  ;;  %v152_v11 = vld [vmem:[%s774_s17 + $0x28] sm:$0xff] }
  0x13   : > { %699 = vmatmul.mubr.msk.f32.vlgmr.msra.gmra.mrb[0].mxu1 %vm180_vm1, %v164_v4  ;;  %677 = vmatprep.mubr.msk.f32.mxu0 %vm180_vm1, %v149_v5  ;;  %v166_v8 = vld [vmem:[%s774_s17 + $0x98] sm:$0xff]  ;;  %v167_v10 = vld [vmem:[%s774_s17 + $0xa0] sm:$0xff]  ;;  %v168_v12 = vld [vmem:[%s774_s17 + $0xa8] sm:$0xff] }
  0x14   : > { %701 = vmatprep.mubr.msk.f32.mxu1 %vm180_vm1, %v165_v6  ;;  %v153_v13 = vld [vmem:[%s774_s17 + $0x30] sm:$0xff]  ;;  %v154_v15 = vld [vmem:[%s774_s17 + $0x38] sm:$0xff]  ;;  %v155_v17 = vld [vmem:[%s774_s17 + $0x40] sm:$0xff] }
  0x15   : > { %v169_v14 = vld [vmem:[%s774_s17 + $0xb0] sm:$0xff]  ;;  %v170_v16 = vld [vmem:[%s774_s17 + $0xb8] sm:$0xff]  ;;  %v171_v18 = vld [vmem:[%s774_s17 + $0xc0] sm:$0xff] }
  0x16   : > { %678 = vmatmul.mubr.msk.f32.gmra.mrb[2].mxu0 %vm180_vm1, %v150_v7  ;;  %v156_v19 = vld [vmem:[%s774_s17 + $0x48] sm:$0xff]  ;;  %v157_v21 = vld [vmem:[%s774_s17 + $0x50] sm:$0xff]  ;;  %v158_v23 = vld [vmem:[%s774_s17 + $0x58] sm:$0xff] }
  0x17   : > { %702 = vmatmul.mubr.msk.f32.gmra.mrb[2].mxu1 %vm180_vm1, %v166_v8  ;;  %680 = vmatprep.mubr.msk.f32.mxu0 %vm180_vm1, %v151_v9  ;;  %v172_v20 = vld [vmem:[%s774_s17 + $0xc8] sm:$0xff]  ;;  %v173_v22 = vld [vmem:[%s774_s17 + $0xd0] sm:$0xff]  ;;  %v174_v24 = vld [vmem:[%s774_s17 + $0xd8] sm:$0xff] }
  0x18   : > { %704 = vmatprep.mubr.msk.f32.mxu1 %vm180_vm1, %v167_v10  ;;  %v159_v25 = vld [vmem:[%s774_s17 + $0x60] sm:$0xff]  ;;  %v160_v27 = vld [vmem:[%s774_s17 + $0x68] sm:$0xff]  ;;  %v161_v29 = vld [vmem:[%s774_s17 + $0x70] sm:$0xff] }
  0x19   : > { %v175_v26 = vld [vmem:[%s774_s17 + $0xe0] sm:$0xff]  ;;  %v176_v28 = vld [vmem:[%s774_s17 + $0xe8] sm:$0xff]  ;;  %v177_v30 = vld [vmem:[%s774_s17 + $0xf0] sm:$0xff] }
  0x1a   : > { %681 = vmatmul.mubr.msk.f32.gmra.mrb[4].mxu0 %vm180_vm1, %v152_v11  ;;  %v162_v31 = vld [vmem:[%s774_s17 + $0x78] sm:$0xff] }
  0x1b   : > { %705 = vmatmul.mubr.msk.f32.gmra.mrb[4].mxu1 %vm180_vm1, %v168_v12  ;;  %683 = vmatprep.mubr.msk.f32.mxu0 %vm180_vm1, %v153_v13  ;;  %v178_v32 = vld [vmem:[%s774_s17 + $0xf8] sm:$0xff] }
  0x1c   : > { %707 = vmatprep.mubr.msk.f32.mxu1 %vm180_vm1, %v169_v14 }
  0x1e   : > { %684 = vmatmul.mubr.msk.f32.gmra.mrb[6].mxu0 %vm180_vm1, %v154_v15 }
  0x1f   : > { %708 = vmatmul.mubr.msk.f32.gmra.mrb[6].mxu1 %vm180_vm1, %v170_v16  ;;  %686 = vmatprep.mubr.msk.f32.mxu0 %vm180_vm1, %v155_v17 }
  0x20   : > { %710 = vmatprep.mubr.msk.f32.mxu1 %vm180_vm1, %v171_v18 }
  0x22   : > { %687 = vmatmul.mubr.msk.f32.gmra.mrb[8].mxu0 %vm180_vm1, %v156_v19 }
  0x23   : > { %711 = vmatmul.mubr.msk.f32.gmra.mrb[8].mxu1 %vm180_vm1, %v172_v20  ;;  %689 = vmatprep.mubr.msk.f32.mxu0 %vm180_vm1, %v157_v21 }
  0x24   : > { %713 = vmatprep.mubr.msk.f32.mxu1 %vm180_vm1, %v173_v22 }
  0x26   : > { %690 = vmatmul.mubr.msk.f32.gmra.mrb[10].mxu0 %vm180_vm1, %v158_v23 }
  0x27   : > { %714 = vmatmul.mubr.msk.f32.gmra.mrb[10].mxu1 %vm180_vm1, %v174_v24  ;;  %692 = vmatprep.mubr.msk.f32.mxu0 %vm180_vm1, %v159_v25 }
  0x28   : > { %716 = vmatprep.mubr.msk.f32.mxu1 %vm180_vm1, %v175_v26 }
  0x2a   : > { %693 = vmatmul.mubr.msk.f32.gmra.mrb[12].mxu0 %vm180_vm1, %v160_v27 }
  0x2b   : > { %717 = vmatmul.mubr.msk.f32.gmra.mrb[12].mxu1 %vm180_vm1, %v176_v28  ;;  %695 = vmatprep.mubr.msk.f32.mxu0 %vm180_vm1, %v161_v29 }
  0x2c   : > { %719 = vmatprep.mubr.msk.f32.mxu1 %vm180_vm1, %v177_v30 }
  0x2e   : > { %696 = vmatmul.mubr.msk.f32.gmra.mrb[14].mxu0 %vm180_vm1, %v162_v31 }
  0x2f   : > { %720 = vmatmul.mubr.msk.f32.gmra.mrb[14].mxu1 %vm180_vm1, %v178_v32 }
  0xe5   : > { %v676_v33 = vpop.f32.mrb[0].mxu0 }
  0xe6   : > { %v700_v34 = vpop.f32.mrb[0].mxu1  ;;  %508 = vst.msk [vmem:[%s845_s20 + $0x8] sm:$0xff] %vm506_vm2, %v676_v33  ;;  %v347_v35 = vpop.f32.mrb[1].mxu0 }
  0xe7   : > { %524 = vst.msk [vmem:[%s845_s20 + $0x88] sm:$0xff] %vm506_vm2, %v700_v34  ;;  %v427_v36 = vpop.f32.mrb[1].mxu1  ;;  %507 = vst.msk [vmem:[%s845_s20] sm:$0xff] %vm506_vm2, %v347_v35 }
  0xe8   : > { %523 = vst.msk [vmem:[%s845_s20 + $0x80] sm:$0xff] %vm506_vm2, %v427_v36 }
  0xe9   : > { %v679_v37 = vpop.f32.mrb[2].mxu0 }
  0xea   : > { %v703_v38 = vpop.f32.mrb[2].mxu1  ;;  %510 = vst.msk [vmem:[%s845_s20 + $0x18] sm:$0xff] %vm506_vm2, %v679_v37  ;;  %v357_v39 = vpop.f32.mrb[3].mxu0 }
  0xeb   : > { %526 = vst.msk [vmem:[%s845_s20 + $0x98] sm:$0xff] %vm506_vm2, %v703_v38  ;;  %v437_v40 = vpop.f32.mrb[3].mxu1  ;;  %509 = vst.msk [vmem:[%s845_s20 + $0x10] sm:$0xff] %vm506_vm2, %v357_v39 }
  0xec   : > { %525 = vst.msk [vmem:[%s845_s20 + $0x90] sm:$0xff] %vm506_vm2, %v437_v40 }
  0xed   : > { %v682_v41 = vpop.f32.mrb[4].mxu0 }
  0xee   : > { %v706_v42 = vpop.f32.mrb[4].mxu1  ;;  %512 = vst.msk [vmem:[%s845_s20 + $0x28] sm:$0xff] %vm506_vm2, %v682_v41  ;;  %v367_v43 = vpop.f32.mrb[5].mxu0 }
  0xef   : > { %528 = vst.msk [vmem:[%s845_s20 + $0xa8] sm:$0xff] %vm506_vm2, %v706_v42  ;;  %v447_v44 = vpop.f32.mrb[5].mxu1  ;;  %511 = vst.msk [vmem:[%s845_s20 + $0x20] sm:$0xff] %vm506_vm2, %v367_v43 }
  0xf0   : > { %527 = vst.msk [vmem:[%s845_s20 + $0xa0] sm:$0xff] %vm506_vm2, %v447_v44 }
  0xf1   : > { %v685_v45 = vpop.f32.mrb[6].mxu0 }
  0xf2   : > { %v709_v46 = vpop.f32.mrb[6].mxu1  ;;  %514 = vst.msk [vmem:[%s845_s20 + $0x38] sm:$0xff] %vm506_vm2, %v685_v45  ;;  %v377_v47 = vpop.f32.mrb[7].mxu0 }
  0xf3   : > { %530 = vst.msk [vmem:[%s845_s20 + $0xb8] sm:$0xff] %vm506_vm2, %v709_v46  ;;  %v457_v48 = vpop.f32.mrb[7].mxu1  ;;  %513 = vst.msk [vmem:[%s845_s20 + $0x30] sm:$0xff] %vm506_vm2, %v377_v47 }
  0xf4   : > { %529 = vst.msk [vmem:[%s845_s20 + $0xb0] sm:$0xff] %vm506_vm2, %v457_v48 }
  0xf5   : > { %v688_v49 = vpop.f32.mrb[8].mxu0 }
  0xf6   : > { %v712_v50 = vpop.f32.mrb[8].mxu1  ;;  %516 = vst.msk [vmem:[%s845_s20 + $0x48] sm:$0xff] %vm506_vm2, %v688_v49  ;;  %v387_v51 = vpop.f32.mrb[9].mxu0 }
  0xf7   : > { %532 = vst.msk [vmem:[%s845_s20 + $0xc8] sm:$0xff] %vm506_vm2, %v712_v50  ;;  %v467_v52 = vpop.f32.mrb[9].mxu1  ;;  %515 = vst.msk [vmem:[%s845_s20 + $0x40] sm:$0xff] %vm506_vm2, %v387_v51 }
  0xf8   : > { %531 = vst.msk [vmem:[%s845_s20 + $0xc0] sm:$0xff] %vm506_vm2, %v467_v52 }
  0xf9   : > { %v691_v53 = vpop.f32.mrb[10].mxu0 }
  0xfa   : > { %v715_v54 = vpop.f32.mrb[10].mxu1  ;;  %518 = vst.msk [vmem:[%s845_s20 + $0x58] sm:$0xff] %vm506_vm2, %v691_v53  ;;  %v397_v55 = vpop.f32.mrb[11].mxu0 }
  0xfb   : > { %534 = vst.msk [vmem:[%s845_s20 + $0xd8] sm:$0xff] %vm506_vm2, %v715_v54  ;;  %v477_v56 = vpop.f32.mrb[11].mxu1  ;;  %517 = vst.msk [vmem:[%s845_s20 + $0x50] sm:$0xff] %vm506_vm2, %v397_v55 }
  0xfc   : > { %533 = vst.msk [vmem:[%s845_s20 + $0xd0] sm:$0xff] %vm506_vm2, %v477_v56 }
  0xfd   : > { %v694_v57 = vpop.f32.mrb[12].mxu0 }
  0xfe   : > { %v718_v58 = vpop.f32.mrb[12].mxu1  ;;  %520 = vst.msk [vmem:[%s845_s20 + $0x68] sm:$0xff] %vm506_vm2, %v694_v57  ;;  %v407_v59 = vpop.f32.mrb[13].mxu0 }
  0xff   : > { %536 = vst.msk [vmem:[%s845_s20 + $0xe8] sm:$0xff] %vm506_vm2, %v718_v58  ;;  %v487_v60 = vpop.f32.mrb[13].mxu1  ;;  %519 = vst.msk [vmem:[%s845_s20 + $0x60] sm:$0xff] %vm506_vm2, %v407_v59 }
 0x100   : > { %535 = vst.msk [vmem:[%s845_s20 + $0xe0] sm:$0xff] %vm506_vm2, %v487_v60 }
 0x101   : > { %v697_v61 = vpop.f32.mrb[14].mxu0 }
 0x102   : > { %v721_v62 = vpop.f32.mrb[14].mxu1  ;;  %522 = vst.msk [vmem:[%s845_s20 + $0x78] sm:$0xff] %vm506_vm2, %v697_v61  ;;  %v417_v63 = vpop.f32.mrb[15].mxu0 }
 0x103   : > { %538 = vst.msk [vmem:[%s845_s20 + $0xf8] sm:$0xff] %vm506_vm2, %v721_v62  ;;  %v497_v0 = vpop.f32.mrb[15].mxu1  ;;  %521 = vst.msk [vmem:[%s845_s20 + $0x70] sm:$0xff] %vm506_vm2, %v417_v63 }
 0x104   : > { %537 = vst.msk [vmem:[%s845_s20 + $0xf0] sm:$0xff] %vm506_vm2, %v497_v0 }
 0x105 PF: > { %s12_s9 = sadd.s32 1, %s738_s9  }
 0x106   : > { %p9_p4 = scmp.ge.s32.totalorder %s12_s9, 4  }
 0x108   :  { %11 = sbr.rel (!%p9_p4) target bundleno = 1 (0x1), region = 58 }

</bundles_post_ra>
